<compile_context>
chip_gen: v7x
topology: tpu7x:2x2x1
jax: 0.10.0
libtpu: 0.0.40
codegen_flags: <defaults>
</compile_context>

<pallas_src>
import functools

import jax
import jax.numpy as jnp
from jax.experimental import pallas as pl
from jax.experimental.pallas import tpu as pltpu


def _iou_kernel(actual_ref, desire_ref, out_ref, acc_ref, *, num_rows):
    """One (TB, C) batch tile: accumulate intersection/union counts."""
    i = pl.program_id(0)

    @pl.when(i == 0)
    def _init():
        acc_ref[0] = 0.0  # intersection count
        acc_ref[1] = 0.0  # union count

    a = actual_ref[...].astype(jnp.float32)   # (TB, C)
    d = desire_ref[...].astype(jnp.float32)   # (TB, C)
    tb = a.shape[0]

    # torch.round(actual).byte()  -> nonzero after round
    # desire.byte()               -> byte() truncates toward zero
    a_b = jnp.round(a) != 0.0
    d_b = jnp.trunc(d) != 0.0

    # Mask rows of the (possibly padded) final tile that are past the true B.
    row = jax.lax.broadcasted_iota(jnp.int32, (tb, 1), 0) + i * tb
    valid = row < num_rows                                   # (TB, 1)

    inter = jnp.where(jnp.logical_and(valid, jnp.logical_and(a_b, d_b)), 1.0, 0.0)
    union = jnp.where(jnp.logical_and(valid, jnp.logical_or(a_b, d_b)), 1.0, 0.0)

    # Lane-axis reduce first (keepdims keeps 2-D layout), then sublane reduce.
    inter_blk = jnp.sum(jnp.sum(inter, axis=1, keepdims=True))
    union_blk = jnp.sum(jnp.sum(union, axis=1, keepdims=True))

    acc_ref[0] += inter_blk
    acc_ref[1] += union_blk

    @pl.when(i == pl.num_programs(0) - 1)
    def _finalize():
        out_ref[0, 0] = (acc_ref[0] + 1e-6) / (acc_ref[1] + 1e-6)


def iou_binary_accuracy(actual, desire, *, block_rows=None,
                        vmem_budget_bytes=16 * 1024 * 1024):
    """Pallas TPU implementation of IoUBinaryAccuray.forward(actual, desire)."""
    B = desire.shape[0]
    a2 = actual.reshape(B, -1)
    d2 = desire.reshape(B, -1)
    C = a2.shape[1]

    # Rows per tile: 2 inputs x 2 pipeline buffers of (TB, C) within budget.
    if block_rows is not None:
        tb = int(block_rows)
    else:
        bytes_per_row = 2 * C * (a2.dtype.itemsize + d2.dtype.itemsize)
        tb = max(1, vmem_budget_bytes // max(bytes_per_row, 1))

    if tb >= B or B <= 8:
        tb = B                            # single full-height block
    else:
        tb = max(8, (tb // 8) * 8)        # sublane-aligned tiles

    num_blocks = pl.cdiv(B, tb)
    kernel = functools.partial(_iou_kernel, num_rows=B)

    out = pl.pallas_call(
        kernel,
        out_shape=jax.ShapeDtypeStruct((1, 1), jnp.float32),
        grid_spec=pltpu.PrefetchScalarGridSpec(
            num_scalar_prefetch=0,
            grid=(num_blocks,),
            in_specs=[
                pl.BlockSpec((tb, C), lambda i: (i, 0)),
                pl.BlockSpec((tb, C), lambda i: (i, 0)),
            ],
            out_specs=pl.BlockSpec(memory_space=pltpu.SMEM),
            scratch_shapes=[pltpu.SMEM((2,), jnp.float32)],
        ),
        compiler_params=pltpu.CompilerParams(
            dimension_semantics=("arbitrary",),
            vmem_limit_bytes=32 * 1024 * 1024,
        ),
    )(a2, d2)
    return out[0, 0]


def _reference_iou(actual, desire):
    B = desire.shape[0]
    a = jnp.round(actual.reshape(B, -1).astype(jnp.float32)) != 0.0
    d = jnp.trunc(desire.reshape(B, -1).astype(jnp.float32)) != 0.0
    inter = jnp.sum(jnp.logical_and(a, d).astype(jnp.float32))
    union = jnp.sum(jnp.logical_or(a, d).astype(jnp.float32))
    return (inter + 1e-6) / (union + 1e-6)


if __name__ == "__main__":
    key = jax.random.PRNGKey(0)
    k1, k2, k3, k4 = jax.random.split(key, 4)

    # Small segmentation-like shapes: (batch, channels, H, W).
    B, Cc, H, W = 2, 1, 16, 16
    actual = jax.nn.sigmoid(jax.random.normal(k1, (B, Cc, H, W), dtype=jnp.float32))
    desire = jax.random.bernoulli(k2, p=0.4, shape=(B, Cc, H, W)).astype(jnp.float32)

    iou = iou_binary_accuracy(actual, desire)
    jax.block_until_ready(iou)
    ref = _reference_iou(actual, desire)
    assert jnp.allclose(iou, ref, rtol=1e-5, atol=1e-6), (iou, ref)

    # Multi-block + ragged-tail path (exercises tiling, accumulation, masking).
    B2 = 20
    actual2 = jax.nn.sigmoid(jax.random.normal(k3, (B2, Cc, H, W), dtype=jnp.float32))
    desire2 = jax.random.bernoulli(k4, p=0.4, shape=(B2, Cc, H, W)).astype(jnp.float32)
    iou2 = iou_binary_accuracy(actual2, desire2, block_rows=8)
    jax.block_until_ready(iou2)
    ref2 = _reference_iou(actual2, desire2)
    assert jnp.allclose(iou2, ref2, rtol=1e-5, atol=1e-6), (iou2, ref2)

    print("KERNEL_OK")
</pallas_src>

<mosaic_0001>
module attributes {stable_mosaic.version = 11 : i64} {
  func.func @_iou_kernel(%arg0: i32, %arg1: memref<2x256xf32, #tpu.memory_space<vmem>>, %arg2: memref<2x256xf32, #tpu.memory_space<vmem>>, %arg3: memref<1x1xf32, #tpu.memory_space<smem>>, %arg4: memref<2xf32, #tpu.memory_space<smem>>) attributes {dimension_semantics = [#tpu.dimension_semantics<arbitrary>], iteration_bounds = array<i64: 1>, scalar_prefetch = 0 : i64, scratch_operands = 1 : i64, tpu.core_type = #tpu.core_type<tc>, window_params = [{transform_indices = @transform_0, window_bounds = array<i64: 2, 256>}, {transform_indices = @transform_1, window_bounds = array<i64: 2, 256>}, {transform_indices = @transform_2, window_bounds = array<i64: 1, 1>}]} {
    %c0_i32 = arith.constant 0 : i32
    %0 = arith.cmpi eq, %arg0, %c0_i32 : i32
    %1 = arith.extui %0 : i1 to i32
    %c0_i32_0 = arith.constant 0 : i32
    %2 = arith.cmpi ne, %1, %c0_i32_0 : i32
    scf.if %2 {
      %cst_20 = arith.constant 0.000000e+00 : f32
      %c0_21 = arith.constant 0 : index
      %54 = memref.load %arg4[%c0_21] : memref<2xf32, #tpu.memory_space<smem>>
      memref.store %cst_20, %arg4[%c0_21] : memref<2xf32, #tpu.memory_space<smem>>
      %cst_22 = arith.constant 0.000000e+00 : f32
      %c1_23 = arith.constant 1 : index
      %55 = memref.load %arg4[%c1_23] : memref<2xf32, #tpu.memory_space<smem>>
      memref.store %cst_22, %arg4[%c1_23] : memref<2xf32, #tpu.memory_space<smem>>
    } else {
    }
    %c0 = arith.constant 0 : index
    %c0_1 = arith.constant 0 : index
    %3 = vector.load %arg1[%c0, %c0_1] : memref<2x256xf32, #tpu.memory_space<vmem>>, vector<2x256xf32>
    %c0_2 = arith.constant 0 : index
    %c0_3 = arith.constant 0 : index
    %4 = vector.load %arg2[%c0_2, %c0_3] : memref<2x256xf32, #tpu.memory_space<vmem>>, vector<2x256xf32>
    %5 = math.roundeven %3 : vector<2x256xf32>
    %cst = arith.constant 0.000000e+00 : f32
    %6 = vector.broadcast %cst : f32 to vector<2x256xf32>
    %7 = arith.cmpf one, %5, %6 : vector<2x256xf32>
    %cst_4 = arith.constant 0.000000e+00 : f32
    %8 = vector.broadcast %cst_4 : f32 to vector<2x256xf32>
    %9 = arith.cmpf olt, %4, %8 : vector<2x256xf32>
    %10 = math.ceil %4 : vector<2x256xf32>
    %11 = math.floor %4 : vector<2x256xf32>
    %12 = arith.select %9, %10, %11 : vector<2x256xi1>, vector<2x256xf32>
    %cst_5 = arith.constant 0.000000e+00 : f32
    %13 = vector.broadcast %cst_5 : f32 to vector<2x256xf32>
    %14 = arith.cmpf one, %12, %13 : vector<2x256xf32>
    %15 = tpu.iota {dimensions = array<i32: 0>} : vector<2x1xi32>
    %c2_i32 = arith.constant 2 : i32
    %16 = arith.muli %arg0, %c2_i32 : i32
    %17 = vector.broadcast %16 : i32 to vector<2x1xi32>
    %18 = arith.addi %15, %17 : vector<2x1xi32>
    %c2_i32_6 = arith.constant 2 : i32
    %19 = vector.broadcast %c2_i32_6 : i32 to vector<2x1xi32>
    %20 = arith.cmpi slt, %18, %19 : vector<2x1xi32>
    %21 = arith.andi %7, %14 : vector<2x256xi1>
    %22 = vector.broadcast %20 : vector<2x1xi1> to vector<2x256xi1>
    %23 = arith.andi %22, %21 : vector<2x256xi1>
    %cst_7 = arith.constant 1.000000e+00 : f32
    %cst_8 = arith.constant 0.000000e+00 : f32
    %24 = vector.broadcast %cst_7 : f32 to vector<2x256xf32>
    %25 = vector.broadcast %cst_8 : f32 to vector<2x256xf32>
    %26 = arith.select %23, %24, %25 : vector<2x256xi1>, vector<2x256xf32>
    %27 = arith.ori %7, %14 : vector<2x256xi1>
    %28 = vector.broadcast %20 : vector<2x1xi1> to vector<2x256xi1>
    %29 = arith.andi %28, %27 : vector<2x256xi1>
    %cst_9 = arith.constant 1.000000e+00 : f32
    %cst_10 = arith.constant 0.000000e+00 : f32
    %30 = vector.broadcast %cst_9 : f32 to vector<2x256xf32>
    %31 = vector.broadcast %cst_10 : f32 to vector<2x256xf32>
    %32 = arith.select %29, %30, %31 : vector<2x256xi1>, vector<2x256xf32>
    %cst_11 = arith.constant dense<0.000000e+00> : vector<2xf32>
    %33 = vector.multi_reduction <add>, %26, %cst_11 [1] : vector<2x256xf32> to vector<2xf32>
    %34 = vector.shape_cast %33 : vector<2xf32> to vector<2x1xf32>
    %35 = vector.shape_cast %34 : vector<2x1xf32> to vector<1x2x1xf32>
    %cst_12 = arith.constant dense<0.000000e+00> : vector<1xf32>
    %36 = vector.multi_reduction <add>, %35, %cst_12 [1, 2] : vector<1x2x1xf32> to vector<1xf32>
    %37 = vector.shape_cast %36 : vector<1xf32> to vector<1x1x1xf32>
    %38 = vector.extract %37[0, 0, 0] : f32 from vector<1x1x1xf32>
    %cst_13 = arith.constant dense<0.000000e+00> : vector<2xf32>
    %39 = vector.multi_reduction <add>, %32, %cst_13 [1] : vector<2x256xf32> to vector<2xf32>
    %40 = vector.shape_cast %39 : vector<2xf32> to vector<2x1xf32>
    %41 = vector.shape_cast %40 : vector<2x1xf32> to vector<1x2x1xf32>
    %cst_14 = arith.constant dense<0.000000e+00> : vector<1xf32>
    %42 = vector.multi_reduction <add>, %41, %cst_14 [1, 2] : vector<1x2x1xf32> to vector<1xf32>
    %43 = vector.shape_cast %42 : vector<1xf32> to vector<1x1x1xf32>
    %44 = vector.extract %43[0, 0, 0] : f32 from vector<1x1x1xf32>
    %c0_15 = arith.constant 0 : index
    %45 = memref.load %arg4[%c0_15] : memref<2xf32, #tpu.memory_space<smem>>
    %46 = arith.addf %45, %38 : f32
    %c0_16 = arith.constant 0 : index
    %47 = memref.load %arg4[%c0_16] : memref<2xf32, #tpu.memory_space<smem>>
    memref.store %46, %arg4[%c0_16] : memref<2xf32, #tpu.memory_space<smem>>
    %c1 = arith.constant 1 : index
    %48 = memref.load %arg4[%c1] : memref<2xf32, #tpu.memory_space<smem>>
    %49 = arith.addf %48, %44 : f32
    %c1_17 = arith.constant 1 : index
    %50 = memref.load %arg4[%c1_17] : memref<2xf32, #tpu.memory_space<smem>>
    memref.store %49, %arg4[%c1_17] : memref<2xf32, #tpu.memory_space<smem>>
    %c0_i32_18 = arith.constant 0 : i32
    %51 = arith.cmpi eq, %arg0, %c0_i32_18 : i32
    %52 = arith.extui %51 : i1 to i32
    %c0_i32_19 = arith.constant 0 : i32
    %53 = arith.cmpi ne, %52, %c0_i32_19 : i32
    scf.if %53 {
      %c0_20 = arith.constant 0 : index
      %54 = memref.load %arg4[%c0_20] : memref<2xf32, #tpu.memory_space<smem>>
      %cst_21 = arith.constant 9.99999997E-7 : f32
      %55 = arith.addf %54, %cst_21 : f32
      %c1_22 = arith.constant 1 : index
      %56 = memref.load %arg4[%c1_22] : memref<2xf32, #tpu.memory_space<smem>>
      %cst_23 = arith.constant 9.99999997E-7 : f32
      %57 = arith.addf %56, %cst_23 : f32
      %58 = arith.divf %55, %57 : f32
      %c0_24 = arith.constant 0 : index
      %c0_25 = arith.constant 0 : index
      %59 = memref.load %arg3[%c0_24, %c0_25] : memref<1x1xf32, #tpu.memory_space<smem>>
      memref.store %58, %arg3[%c0_24, %c0_25] : memref<1x1xf32, #tpu.memory_space<smem>>
    } else {
    }
    return
  }
  func.func @transform_0(%arg0: i32) -> (i32, i32) {
    %c0_i32 = arith.constant 0 : i32
    %c0_i32_0 = arith.constant 0 : i32
    return %arg0, %c0_i32 : i32, i32
  }
  func.func @transform_1(%arg0: i32) -> (i32, i32) {
    %c0_i32 = arith.constant 0 : i32
    %c0_i32_0 = arith.constant 0 : i32
    return %arg0, %c0_i32 : i32, i32
  }
  func.func @transform_2(%arg0: i32) -> (i32, i32) {
    %c0_i32 = arith.constant 0 : i32
    %c0_i32_0 = arith.constant 0 : i32
    %c0_i32_1 = arith.constant 0 : i32
    return %c0_i32, %c0_i32_0 : i32, i32
  }
}

</mosaic_0001>

<bundles_post_ra>
// kernel: tpu_custom_call.1
= control target key start
LH: loop header
LB: loop body
LE: loop exit
PB: predicated region body
PF: predicated region fallthrough
CT: control target
= control target key end

     0   :  { %7 = vsyncpa [#allocation4], 0  ;;  %s303_s0 = inlined_call_operand.hbm [shape: f32[2,256], index: 0, kind: input, shape index: {}]   ;;  %s304_s1 = inlined_call_operand.hbm [shape: f32[2,256], index: 1, kind: input, shape index: {}]   ;;  %s305_s2 = inlined_call_operand.hbm [shape: f32[1,1], index: 2, kind: output, shape index: {}]  }
   0x1   :  { %8 = vsyncpa [#allocation7], 0 }
   0x2   :  { %9 = vsyncpa [#allocation5], 0  ;;  %s238_s9 = smov [#allocation3]   ;;  %s239_s11 = smov [#allocation6]  }
   0x3   :  { %s16_s10 = sshll.u32 %s238_s9, 4  ;;  %s26_s12 = sshll.u32 %s239_s11, 4  ;;  %s17_s10 = int_to_ptr.vmem [resolvable:$true] %s16_s10  ;;  %s27_s12 = int_to_ptr.vmem [resolvable:$true] %s26_s12 }
   0x4   :  { %s178_s15 = scalar_lea.hbm %s303_s0, 64 }
   0x5   :  { %p179_p0 = scmp.ne.s32.totalorder %s303_s0, %s178_s15  ;;  %p182_p1 = scmp.lt.u32.totalorder %s178_s15, %s303_s0 }
   0x7   :  { %p184_p2 = pnand %p182_p1, %p179_p0 }
   0x9   :  { %187 = shalt.err (!%p184_p2)
}
   0xa   :  { %s188_s20 = scalar_lea.vmem %s17_s10, 64  ;;  %p193_p4 = scmp.lt.s32.totalorder %s17_s10, %s17_s10 }
   0xb   :  { %p189_p3 = scmp.ne.s32.totalorder %s17_s10, %s188_s20  ;;  %p194_p5 = scmp.lt.s32.totalorder %s188_s20, %s188_s20 }
   0xd   :  { %p195_p6 = por %p194_p5, %p193_p4 }
   0xf   :  { %p196_p7 = pnand %p195_p6, %p189_p3 }
  0x11   :  { %199 = shalt.err (!%p196_p7)
}
  0x12   :  { %19 = dma.hbm_to_vmem [thread:$0]  %s303_s0, 64, %s17_s10, [#allocation4]  }
  0x13   :  { %s200_s25 = scalar_lea.hbm %s304_s1, 64 }
  0x14   :  { %p201_p8 = scmp.ne.s32.totalorder %s304_s1, %s200_s25  ;;  %p204_p9 = scmp.lt.u32.totalorder %s200_s25, %s304_s1 }
  0x16   :  { %p206_p10 = pnand %p204_p9, %p201_p8 }
  0x18   :  { %209 = shalt.err (!%p206_p10)
}
  0x19   :  { %s210_s30 = scalar_lea.vmem %s27_s12, 64  ;;  %p215_p12 = scmp.lt.s32.totalorder %s27_s12, %s27_s12 }
  0x1a   :  { %p211_p11 = scmp.ne.s32.totalorder %s27_s12, %s210_s30  ;;  %p216_p13 = scmp.lt.s32.totalorder %s210_s30, %s210_s30 }
  0x1c   :  { %p217_p0 = por %p216_p13, %p215_p12 }
  0x1e   :  { %p218_p1 = pnand %p217_p0, %p211_p11 }
  0x20   :  { %221 = shalt.err (!%p218_p1)
}
  0x21   :  { %29 = dma.hbm_to_vmem [thread:$0]  %s304_s1, 64, %s27_s12, [#allocation7]  }
  0x22   :  { %232 = dma.done.wait [#allocation4], 64  }
  0x23   :  { %233 = vsyncadd [#allocation4], 4294967232 }
  0x24   :  { %234 = dma.done.wait [#allocation7], 64  }
  0x25   :  { %235 = vsyncadd [#allocation7], 4294967232  ;;  %v53_v0 = vlaneseq  ;;  %v240_v1 = vmov 1983009808   ;;  %v44_v5 = vld [vmem:[#allocation3] sm:$0xf] }
  0x26   :  { %v64_v2 = vunpack.c.l.s4 %v240_v1  ;;  %v45_v6 = vld [vmem:[#allocation6] sm:$0xf]  ;;  %v163_v7 = vround.rtne.f32 %v44_v5  ;;  %v241_v12 = vmov 0   ;;  %vm93_vm7 = vcmask 1041408   ;;  %s222_s11 = scalar_lea.hbm %s305_s2, 16 }
  0x27   :  { %v54_v3 = vshrl.u32 %v53_v0, 7  ;;  %vm48_vm0 = vcmp.lt.f32.partialorder %v45_v6, 0.0  ;;  %v49_v8 = vceil.f32 %v45_v6  ;;  %v50_v9 = vfloor.f32 %v45_v6  ;;  %p223_p2 = scmp.ne.s32.totalorder %s305_s2, %s222_s11  ;;  %p226_p3 = scmp.lt.u32.totalorder %s222_s11, %s305_s2 }
  0x28   :  { %v65_v4 = vunpack.c.0.s8 %v64_v2  ;;  %vm47_vm1 = vcmp.ne.f32.partialorder %v163_v7, 0.0  ;;  %v242_v19 = vmov 0.0   ;;  %vm99_vm15 = vcmask 1024  }
  0x29   :  { %v51_v10 = vsel %vm48_vm0, %v49_v8, %v50_v9  ;;  %vm58_vm5 = vcmp.lt.s32.totalorder %v54_v3, 2  ;;  %p228_p4 = pnand %p226_p3, %p223_p2 }
  0x2a   :  { %v68_v11 = vsub.s32 %v65_v4, %v54_v3  ;;  %vm52_vm2 = vcmp.ne.f32.partialorder %v51_v10, 0.0 }
  0x2b   :  { %vm59_vm3 = vmand %vm47_vm1, %vm52_vm2 }
  0x2c   :  { %v62_v13 = vsel %vm59_vm3, 1, %v241_v12  ;;  %vm77_vm4 = vmor %vm47_vm1, %vm52_vm2 }
  0x2d   :  { %v69_v14 = vrot.slane %v62_v13, %v68_v11  ;;  %v78_v15 = vsel %vm77_vm4, 1, %v241_v12 }
  0x2e   :  { %v85_v16 = vrot.slane %v78_v15, %v68_v11 }
  0x2f   :  { %v70_v17 = vcombine.high %v69_v14, %v69_v14  ;;  %vm71_vm6 = vcmp.ne.s32.totalorder %v69_v14, 0 }
  0x30   :  { %vm73_vm8 = vmand %vm58_vm5, %vm71_vm6  ;;  %v86_v18 = vcombine.high %v85_v16, %v85_v16  ;;  %vm87_vm9 = vcmp.ne.s32.totalorder %v85_v16, 0 }
  0x31   :  { %vm72_vm10 = vcmp.ne.s32.totalorder %v70_v17, 0  ;;  %v75_v20 = vsel %vm73_vm8, 1.0, %v242_v19  ;;  %vm89_vm11 = vmand %vm58_vm5, %vm87_vm9 }
  0x32   :  { %vm74_vm12 = vmand %vm58_vm5, %vm72_vm10  ;;  %v94_v21 = vsel %vm93_vm7, %v75_v20, 0.0  ;;  %vm88_vm13 = vcmp.ne.s32.totalorder %v86_v18, 0  ;;  %v91_v22 = vsel %vm89_vm11, 1.0, %v242_v19 }
  0x33   :  { %v76_v23 = vsel %vm74_vm12, 1.0, %v242_v19  ;;  %vm90_vm14 = vmand %vm58_vm5, %vm88_vm13  ;;  %v110_v26 = vsel %vm93_vm7, %v91_v22, 0.0 }
  0x34   :  { %v95_v24 = vsel %vm93_vm7, %v76_v23, 0.0  ;;  %v92_v25 = vsel %vm90_vm14, 1.0, %v242_v19 }
  0x35   :  { %v96_v27 = vadd.f32 %v95_v24, %v94_v21  ;;  %v111_v28 = vsel %vm93_vm7, %v92_v25, 0.0 }
  0x36   :  { %v112_v29 = vadd.f32 %v111_v28, %v110_v26 }
  0x37   :  { %97 = vadd.xlane.f32.xlu0 %v96_v27 }
  0x3b   :  { %113 = vadd.xlane.f32.xlu0 %v112_v29 }
  0xc4   :  { %v98_v30 = vpop.xlane.xlu0 %97 }
  0xc5   :  { %v100_v31 = vsel %vm99_vm15, %v98_v30, 0.0 }
  0xc6   :  { %101 = vadd.xlane.f32.xlu1 %v100_v31 }
  0xc8   :  { %v114_v32 = vpop.xlane.xlu0 %113 }
  0xc9   :  { %v115_v33 = vsel %vm99_vm15, %v114_v32, 0.0 }
  0xca   :  { %116 = vadd.xlane.f32.xlu1 %v115_v33 }
 0x153   :  { %v102_v34 = vpop.xlane.xlu1 %101 }
 0x154   :  { %v103_v35 = vrot.slane %v102_v34, 4 }
 0x156   :  { %v104_v36 = vadd.f32 %v103_v35, %v102_v34 }
 0x157   :  { %v117_v37 = vpop.xlane.xlu1 %116 }
 0x158   :  { %v105_v38 = vrot.slane %v104_v36, 2  ;;  %v118_v39 = vrot.slane %v117_v37, 4 }
 0x15a   :  { %v119_v40 = vadd.f32 %v118_v39, %v117_v37  ;;  %v106_v41 = vadd.f32 %v105_v38, %v104_v36 }
 0x15c   :  { %v120_v42 = vrot.slane %v119_v40, 2  ;;  %v107_v43 = vrot.slane %v106_v41, 1 }
 0x15e   :  { %v121_v44 = vadd.f32 %v120_v42, %v119_v40  ;;  %v108_v45 = vadd.f32 %v107_v43, %v106_v41 }
 0x160   :  { %164 = vpush %v108_v45  ;;  %v122_v46 = vrot.slane %v121_v44, 1 }
 0x162   :  { %v123_v47 = vadd.f32 %v122_v46, %v121_v44 }
 0x164   :  { %166 = vpush %v123_v47 }
 0x191   :  { %s165_s1 = spop %164 }
 0x192   :  { %s137_s6 = sadd.f32 1e-06, %s165_s1 }
 0x195   :  { %s167_s4 = spop %166 }
 0x196   :  { %s139_s5 = sadd.f32 1e-06, %s167_s4 }
 0x198   :  { %v140_v48 = vstv %s139_s5 }
 0x199   :  { %176 = vrcp.f32 %v140_v48 }
 0x1a3   :  { %v177_v49 = vpop.eup %176 }
 0x1a4   :  { %168 = vpush %v177_v49 }
 0x1d5   :  { %s169_s7 = spop %168 }
 0x1d6   :  { %s143_s8 = smul.f32 %s169_s7, %s137_s6 }
 0x1d8   :  { %145 = sst [smem:[#allocation8]] %s143_s8 }
 0x1d9   :  { %231 = shalt.err (!%p228_p4)
}
 0x1da   :  { %s243_s16 = smov [#allocation8]  }
 0x1db   :  { %153 = dma.smem_to_hbm %s243_s16, 16, %s305_s2, [#allocation5]  }
 0x1dc   :  { %236 = dma.done.wait [#allocation5], 16  }
 0x1dd   :  { %237 = vsyncadd [#allocation5], 4294967280 }
 0x1de   :  { %157 = sfence }
 0x1df   :  { %158 = vsyncpa [#allocation4], 1 }
 0x1e0   :  { %159 = vsyncpa [#allocation7], 1 }
 0x1e1   :  { %160 = vsyncpa [#allocation5], 1 }

</bundles_post_ra>
